<compile_context>
chip_gen: v7x
topology: tpu7x:2x2x1
jax: 0.10.0
libtpu: 0.0.40
codegen_flags: <defaults>
</compile_context>

<pallas_src>
import functools

import jax
import jax.numpy as jnp
from jax.experimental import pallas as pl
from jax.experimental.pallas import tpu as pltpu


def _round_up(n, m):
    return ((n + m - 1) // m) * m


def _mdn_kernel(n_gauss, n_go,
                x_ref, u_ref,
                w1x_ref, w1u_ref, b1_ref,
                wh_ref, wx_ref, bh_ref,
                out_ref):
    """One batch tile: hidden layer + fused (pi|sigma|mu) heads, packed output."""
    x = x_ref[...]

    # hidden: h = sin([x, u] @ W1 + b1), split matmuls so no concat is needed
    h = jnp.sin(
        jnp.dot(x, w1x_ref[...], preferred_element_type=jnp.float32)
        + jnp.dot(u_ref[...], w1u_ref[...], preferred_element_type=jnp.float32)
        + b1_ref[...])

    # fused heads: z = h @ [Wpi|Wsig|Wmu] + x @ [0|0|tiled-I] + [bpi+1e-3|bsig|bmu]
    # (the x term folds `mu += x` into the MXU pass; lanes are padded to 128)
    z = (jnp.dot(h, wh_ref[...], preferred_element_type=jnp.float32)
         + jnp.dot(x, wx_ref[...], preferred_element_type=jnp.float32)
         + bh_ref[...])

    G, GO = n_gauss, n_go
    lane = jax.lax.broadcasted_iota(jnp.int32, z.shape, dimension=1)
    is_pi = lane < G
    is_sig = (lane >= G) & (lane < G + GO)
    is_mu = (lane >= G + GO) & (lane < G + 2 * GO)

    # pi = softmax over the first G lanes (masked reductions, EUP reciprocal
    # for the denominator; exp(-inf) = 0 keeps non-pi lanes out of the sum)
    neg_inf = jnp.float32(-jnp.inf)
    m = jnp.max(jnp.where(is_pi, z, neg_inf), axis=-1, keepdims=True)
    e = jnp.exp(jnp.where(is_pi, z - m, neg_inf))
    pi = e * pl.reciprocal(jnp.sum(e, axis=-1, keepdims=True), approx=True)

    # sigma = exp(clamp(.)) computed full-width (clamp bounds it); mu lanes of
    # z already include +x from the fused matmul; pad lanes become 0.
    sigma = jnp.exp(jnp.clip(z, -20.0, 4.0))

    out_ref[...] = jnp.where(is_pi, pi,
                   jnp.where(is_sig, sigma,
                   jnp.where(is_mu, z, jnp.float32(0.0))))


def fuse_params(params, *, n_gaussians, num_outputs):
    """Fold the three heads (+ the mu+=x add and the +0.001) into one
    lane-padded weight/bias pair; split W1 so the kernel needs no concat."""
    G, O = n_gaussians, num_outputs
    GO = G * O
    n_used = G + 2 * GO
    NP = _round_up(n_used, 128)

    w1 = params["w1"].astype(jnp.float32)
    w1x, w1u = w1[:O, :], w1[O:, :]
    b1 = params["b1"].astype(jnp.float32)

    wh = jnp.concatenate(
        [params["wpi"], params["wsig"], params["wmu"]], axis=1).astype(jnp.float32)
    bh = jnp.concatenate(
        [params["bpi"] + 0.001, params["bsig"], params["bmu"]],
        axis=1).astype(jnp.float32)
    # x's contribution: identity into every gaussian's mu block, zeros elsewhere
    wx = jnp.concatenate(
        [jnp.zeros((O, G + GO), jnp.float32),
         jnp.tile(jnp.eye(O, dtype=jnp.float32), (1, G))], axis=1)

    pad = NP - n_used
    if pad:
        wh = jnp.pad(wh, ((0, 0), (0, pad)))
        wx = jnp.pad(wx, ((0, 0), (0, pad)))
        bh = jnp.pad(bh, ((0, 0), (0, pad)))
    return dict(w1x=w1x, w1u=w1u, b1=b1, wh=wh, wx=wx, bh=bh)


def mdn_dyn_forward(x, u, fused, *, n_gaussians, num_outputs, tile_b=512):
    """Runs the MDNDyn forward pass in a single gridded Pallas kernel.

    x: (B, num_outputs) f32     u: (B, num_inputs - num_outputs) f32
    Returns (pi, sigma, mu) with shapes (B, G), (B, G, O), (B, G, O).
    """
    B = x.shape[0]
    G, O = n_gaussians, num_outputs
    GO = G * O
    U = u.shape[1]
    H = fused["w1x"].shape[1]
    NP = fused["wh"].shape[1]

    # Batch tile: multiple of 8 sublanes; pad the batch to a tile multiple.
    TILE_B = min(tile_b, _round_up(B, 8))
    Bp = _round_up(B, TILE_B)
    if Bp != B:
        x_in = jnp.pad(x, ((0, Bp - B), (0, 0)))
        u_in = jnp.pad(u, ((0, Bp - B), (0, 0)))
    else:
        x_in, u_in = x, u

    def batch_spec(cols):
        return pl.BlockSpec((TILE_B, cols), lambda i: (i, 0))

    def resident(shape):
        return pl.BlockSpec(shape, lambda i: (0, 0))

    out = pl.pallas_call(
        functools.partial(_mdn_kernel, G, GO),
        out_shape=jax.ShapeDtypeStruct((Bp, NP), jnp.float32),
        grid=(Bp // TILE_B,),
        in_specs=[
            batch_spec(O),        # x
            batch_spec(U),        # u
            resident((O, H)),     # w1x
            resident((U, H)),     # w1u
            resident((1, H)),     # b1
            resident((H, NP)),    # fused head weight
            resident((O, NP)),    # x -> mu identity weight
            resident((1, NP)),    # fused head bias (+0.001 folded)
        ],
        out_specs=pl.BlockSpec((TILE_B, NP), lambda i: (i, 0)),
        compiler_params=pltpu.CompilerParams(
            dimension_semantics=("parallel",)),
    )(x_in, u_in, fused["w1x"], fused["w1u"], fused["b1"],
      fused["wh"], fused["wx"], fused["bh"])

    pi = out[:B, :G]
    sigma = out[:B, G:G + GO].reshape(B, G, O)
    mu = out[:B, G + GO:G + 2 * GO].reshape(B, G, O)
    return pi, sigma, mu


def init_params(key, num_inputs, num_outputs, n_hidden, n_gaussians):
    """Deterministic synthetic parameters (weights stored [in, out])."""
    ks = jax.random.split(key, 8)
    G, O, H = n_gaussians, num_outputs, n_hidden

    def lin(kw, kb, fan_in, fan_out):
        bound = 1.0 / jnp.sqrt(fan_in)
        w = jax.random.uniform(kw, (fan_in, fan_out), jnp.float32, -bound, bound)
        b = jax.random.uniform(kb, (1, fan_out), jnp.float32, -bound, bound)
        return w, b

    w1, b1 = lin(ks[0], ks[1], num_inputs, H)
    wpi, bpi = lin(ks[2], ks[3], H, G)
    wsig, bsig = lin(ks[4], ks[5], H, G * O)
    wmu, bmu = lin(ks[6], ks[7], H, G * O)
    return dict(w1=w1, b1=b1, wpi=wpi, bpi=bpi,
                wsig=wsig, bsig=bsig, wmu=wmu, bmu=bmu)


def _reference_forward(x, u, params, n_gaussians, num_outputs):
    """Pure-JAX reference of MDNDyn.forward for verification."""
    xu = jnp.concatenate([x, u], axis=1)
    h = jnp.sin(xu @ params["w1"] + params["b1"])
    pi = jax.nn.softmax(h @ params["wpi"] + params["bpi"] + 0.001, axis=-1)
    sigma = jnp.exp(jnp.clip(h @ params["wsig"] + params["bsig"], -20, 4))
    mu = (h @ params["wmu"] + params["bmu"]).reshape(-1, n_gaussians, num_outputs)
    mu = mu + x[:, None, :]
    return pi, sigma.reshape(-1, n_gaussians, num_outputs), mu


if __name__ == "__main__":
    # Small shapes consistent with the module: state dim O=4, control dim 4
    # -> num_inputs (concat dim) = 8, hidden = 32, gaussians = 8, batch = 8.
    B = 8
    num_outputs = 4          # dim of x (state), since mu += x broadcast over G
    u_dim = 4
    num_inputs = num_outputs + u_dim
    n_hidden = 32
    n_gaussians = 8

    key = jax.random.PRNGKey(0)
    kx, ku, kp = jax.random.split(key, 3)
    x = jax.random.normal(kx, (B, num_outputs), jnp.float32)
    u = jax.random.normal(ku, (B, u_dim), jnp.float32)
    params = init_params(kp, num_inputs, num_outputs, n_hidden, n_gaussians)
    fused = fuse_params(params, n_gaussians=n_gaussians, num_outputs=num_outputs)

    pi, sigma, mu = mdn_dyn_forward(
        x, u, fused, n_gaussians=n_gaussians, num_outputs=num_outputs)
    jax.block_until_ready((pi, sigma, mu))

    # sanity check against pure-JAX reference
    pi_r, sigma_r, mu_r = _reference_forward(x, u, params, n_gaussians, num_outputs)
    assert pi.shape == (B, n_gaussians)
    assert sigma.shape == (B, n_gaussians, num_outputs)
    assert mu.shape == (B, n_gaussians, num_outputs)
    # pi uses the EUP approx reciprocal -> slightly looser tolerance
    assert jnp.allclose(pi, pi_r, atol=1e-3, rtol=1e-3)
    assert jnp.allclose(sigma, sigma_r, atol=1e-4, rtol=1e-4)
    assert jnp.allclose(mu, mu_r, atol=1e-5)

    # TODO(synk): `sample` uses torch.multinomial (host-side categorical RNG) and
    # `logits` is a separate loss path; only forward() is implemented in-kernel.
    print("KERNEL_OK")
</pallas_src>

<mosaic_0001>
module attributes {stable_mosaic.version = 11 : i64} {
  func.func @_mdn_kernel(%arg0: i32, %arg1: memref<8x4xf32, #tpu.memory_space<vmem>>, %arg2: memref<8x4xf32, #tpu.memory_space<vmem>>, %arg3: memref<4x32xf32, #tpu.memory_space<vmem>>, %arg4: memref<4x32xf32, #tpu.memory_space<vmem>>, %arg5: memref<1x32xf32, #tpu.memory_space<vmem>>, %arg6: memref<32x128xf32, #tpu.memory_space<vmem>>, %arg7: memref<4x128xf32, #tpu.memory_space<vmem>>, %arg8: memref<1x128xf32, #tpu.memory_space<vmem>>, %arg9: memref<8x128xf32, #tpu.memory_space<vmem>>) attributes {dimension_semantics = [#tpu.dimension_semantics<parallel>], iteration_bounds = array<i64: 1>, scalar_prefetch = 0 : i64, scratch_operands = 0 : i64, tpu.core_type = #tpu.core_type<tc>, window_params = [{transform_indices = @transform_0, window_bounds = array<i64: 8, 4>}, {transform_indices = @transform_1, window_bounds = array<i64: 8, 4>}, {pipeline_mode = #tpu.pipeline_mode<synchronous>, transform_indices = @transform_2, window_bounds = array<i64: 4, 32>}, {pipeline_mode = #tpu.pipeline_mode<synchronous>, transform_indices = @transform_3, window_bounds = array<i64: 4, 32>}, {pipeline_mode = #tpu.pipeline_mode<synchronous>, transform_indices = @transform_4, window_bounds = array<i64: 1, 32>}, {pipeline_mode = #tpu.pipeline_mode<synchronous>, transform_indices = @transform_5, window_bounds = array<i64: 32, 128>}, {pipeline_mode = #tpu.pipeline_mode<synchronous>, transform_indices = @transform_6, window_bounds = array<i64: 4, 128>}, {pipeline_mode = #tpu.pipeline_mode<synchronous>, transform_indices = @transform_7, window_bounds = array<i64: 1, 128>}, {transform_indices = @transform_8, window_bounds = array<i64: 8, 128>}]} {
    %c0 = arith.constant 0 : index
    %c0_0 = arith.constant 0 : index
    %0 = vector.load %arg1[%c0, %c0_0] : memref<8x4xf32, #tpu.memory_space<vmem>>, vector<8x4xf32>
    %c0_1 = arith.constant 0 : index
    %c0_2 = arith.constant 0 : index
    %1 = vector.load %arg3[%c0_1, %c0_2] : memref<4x32xf32, #tpu.memory_space<vmem>>, vector<4x32xf32>
    %cst = arith.constant dense<0.000000e+00> : vector<8x32xf32>
    %2 = tpu.matmul %0, %1, %cst {dimension_numbers = #tpu.dot_dimension_numbers<[1], [0], [0], [1], [0, 0, 1, 1], [], []>} : vector<8x4xf32>, vector<4x32xf32>, vector<8x32xf32> -> vector<8x32xf32>
    %c0_3 = arith.constant 0 : index
    %c0_4 = arith.constant 0 : index
    %3 = vector.load %arg2[%c0_3, %c0_4] : memref<8x4xf32, #tpu.memory_space<vmem>>, vector<8x4xf32>
    %c0_5 = arith.constant 0 : index
    %c0_6 = arith.constant 0 : index
    %4 = vector.load %arg4[%c0_5, %c0_6] : memref<4x32xf32, #tpu.memory_space<vmem>>, vector<4x32xf32>
    %cst_7 = arith.constant dense<0.000000e+00> : vector<8x32xf32>
    %5 = tpu.matmul %3, %4, %cst_7 {dimension_numbers = #tpu.dot_dimension_numbers<[1], [0], [0], [1], [0, 0, 1, 1], [], []>} : vector<8x4xf32>, vector<4x32xf32>, vector<8x32xf32> -> vector<8x32xf32>
    %6 = arith.addf %2, %5 : vector<8x32xf32>
    %c0_8 = arith.constant 0 : index
    %c0_9 = arith.constant 0 : index
    %7 = vector.load %arg5[%c0_8, %c0_9] : memref<1x32xf32, #tpu.memory_space<vmem>>, vector<1x32xf32>
    %8 = vector.broadcast %7 : vector<1x32xf32> to vector<8x32xf32>
    %9 = arith.addf %6, %8 : vector<8x32xf32>
    %10 = math.sin %9 : vector<8x32xf32>
    %c0_10 = arith.constant 0 : index
    %c0_11 = arith.constant 0 : index
    %11 = vector.load %arg6[%c0_10, %c0_11] : memref<32x128xf32, #tpu.memory_space<vmem>>, vector<32x128xf32>
    %cst_12 = arith.constant dense<0.000000e+00> : vector<8x128xf32>
    %12 = tpu.matmul %10, %11, %cst_12 {dimension_numbers = #tpu.dot_dimension_numbers<[1], [0], [0], [1], [0, 0, 1, 1], [], []>} : vector<8x32xf32>, vector<32x128xf32>, vector<8x128xf32> -> vector<8x128xf32>
    %c0_13 = arith.constant 0 : index
    %c0_14 = arith.constant 0 : index
    %13 = vector.load %arg7[%c0_13, %c0_14] : memref<4x128xf32, #tpu.memory_space<vmem>>, vector<4x128xf32>
    %cst_15 = arith.constant dense<0.000000e+00> : vector<8x128xf32>
    %14 = tpu.matmul %0, %13, %cst_15 {dimension_numbers = #tpu.dot_dimension_numbers<[1], [0], [0], [1], [0, 0, 1, 1], [], []>} : vector<8x4xf32>, vector<4x128xf32>, vector<8x128xf32> -> vector<8x128xf32>
    %15 = arith.addf %12, %14 : vector<8x128xf32>
    %c0_16 = arith.constant 0 : index
    %c0_17 = arith.constant 0 : index
    %16 = vector.load %arg8[%c0_16, %c0_17] : memref<1x128xf32, #tpu.memory_space<vmem>>, vector<1x128xf32>
    %17 = vector.broadcast %16 : vector<1x128xf32> to vector<8x128xf32>
    %18 = arith.addf %15, %17 : vector<8x128xf32>
    %19 = tpu.iota {dimensions = array<i32: 1>} : vector<8x128xi32>
    %c8_i32 = arith.constant 8 : i32
    %20 = vector.broadcast %c8_i32 : i32 to vector<8x128xi32>
    %21 = arith.cmpi slt, %19, %20 : vector<8x128xi32>
    %c8_i32_18 = arith.constant 8 : i32
    %22 = vector.broadcast %c8_i32_18 : i32 to vector<8x128xi32>
    %23 = arith.cmpi sge, %19, %22 : vector<8x128xi32>
    %c40_i32 = arith.constant 40 : i32
    %24 = vector.broadcast %c40_i32 : i32 to vector<8x128xi32>
    %25 = arith.cmpi slt, %19, %24 : vector<8x128xi32>
    %26 = arith.andi %23, %25 : vector<8x128xi1>
    %c40_i32_19 = arith.constant 40 : i32
    %27 = vector.broadcast %c40_i32_19 : i32 to vector<8x128xi32>
    %28 = arith.cmpi sge, %19, %27 : vector<8x128xi32>
    %c72_i32 = arith.constant 72 : i32
    %29 = vector.broadcast %c72_i32 : i32 to vector<8x128xi32>
    %30 = arith.cmpi slt, %19, %29 : vector<8x128xi32>
    %31 = arith.andi %28, %30 : vector<8x128xi1>
    %cst_20 = arith.constant 0xFF800000 : f32
    %32 = vector.broadcast %cst_20 : f32 to vector<8x128xf32>
    %33 = arith.select %21, %18, %32 : vector<8x128xi1>, vector<8x128xf32>
    %cst_21 = arith.constant dense<0xFF800000> : vector<8xf32>
    %34 = vector.multi_reduction <maximumf>, %33, %cst_21 [1] : vector<8x128xf32> to vector<8xf32>
    %35 = vector.shape_cast %34 : vector<8xf32> to vector<8x1xf32>
    %36 = vector.broadcast %35 : vector<8x1xf32> to vector<8x128xf32>
    %37 = arith.subf %18, %36 : vector<8x128xf32>
    %cst_22 = arith.constant 0xFF800000 : f32
    %38 = vector.broadcast %cst_22 : f32 to vector<8x128xf32>
    %39 = arith.select %21, %37, %38 : vector<8x128xi1>, vector<8x128xf32>
    %40 = math.exp %39 : vector<8x128xf32>
    %cst_23 = arith.constant dense<0.000000e+00> : vector<8xf32>
    %41 = vector.multi_reduction <add>, %40, %cst_23 [1] : vector<8x128xf32> to vector<8xf32>
    %42 = vector.shape_cast %41 : vector<8xf32> to vector<8x1xf32>
    %43 = tpu.reciprocal %42 {approx = true} : vector<8x1xf32> -> vector<8x1xf32>
    %44 = vector.broadcast %43 : vector<8x1xf32> to vector<8x128xf32>
    %45 = arith.mulf %40, %44 : vector<8x128xf32>
    %cst_24 = arith.constant -2.000000e+01 : f32
    %cst_25 = arith.constant 4.000000e+00 : f32
    %46 = vector.broadcast %cst_24 : f32 to vector<8x128xf32>
    %47 = arith.maximumf %46, %18 : vector<8x128xf32>
    %48 = vector.broadcast %cst_25 : f32 to vector<8x128xf32>
    %49 = arith.minimumf %48, %47 : vector<8x128xf32>
    %50 = math.exp %49 : vector<8x128xf32>
    %cst_26 = arith.constant 0.000000e+00 : f32
    %51 = vector.broadcast %cst_26 : f32 to vector<8x128xf32>
    %52 = arith.select %31, %18, %51 : vector<8x128xi1>, vector<8x128xf32>
    %53 = arith.select %26, %50, %52 : vector<8x128xi1>, vector<8x128xf32>
    %54 = arith.select %21, %45, %53 : vector<8x128xi1>, vector<8x128xf32>
    %c0_27 = arith.constant 0 : index
    %c0_28 = arith.constant 0 : index
    %55 = vector.load %arg9[%c0_27, %c0_28] : memref<8x128xf32, #tpu.memory_space<vmem>>, vector<8x128xf32>
    tpu.vector_store %arg9[%c0_27, %c0_28], %54 {strides = array<i32>} : memref<8x128xf32, #tpu.memory_space<vmem>>, vector<8x128xf32>,
    return
  }
  func.func @transform_0(%arg0: i32) -> (i32, i32) {
    %c0_i32 = arith.constant 0 : i32
    %c0_i32_0 = arith.constant 0 : i32
    return %arg0, %c0_i32 : i32, i32
  }
  func.func @transform_1(%arg0: i32) -> (i32, i32) {
    %c0_i32 = arith.constant 0 : i32
    %c0_i32_0 = arith.constant 0 : i32
    return %arg0, %c0_i32 : i32, i32
  }
  func.func @transform_2(%arg0: i32) -> (i32, i32) {
    %c0_i32 = arith.constant 0 : i32
    %c0_i32_0 = arith.constant 0 : i32
    %c0_i32_1 = arith.constant 0 : i32
    return %c0_i32, %c0_i32_0 : i32, i32
  }
  func.func @transform_3(%arg0: i32) -> (i32, i32) {
    %c0_i32 = arith.constant 0 : i32
    %c0_i32_0 = arith.constant 0 : i32
    %c0_i32_1 = arith.constant 0 : i32
    return %c0_i32, %c0_i32_0 : i32, i32
  }
  func.func @transform_4(%arg0: i32) -> (i32, i32) {
    %c0_i32 = arith.constant 0 : i32
    %c0_i32_0 = arith.constant 0 : i32
    %c0_i32_1 = arith.constant 0 : i32
    return %c0_i32, %c0_i32_0 : i32, i32
  }
  func.func @transform_5(%arg0: i32) -> (i32, i32) {
    %c0_i32 = arith.constant 0 : i32
    %c0_i32_0 = arith.constant 0 : i32
    %c0_i32_1 = arith.constant 0 : i32
    return %c0_i32, %c0_i32_0 : i32, i32
  }
  func.func @transform_6(%arg0: i32) -> (i32, i32) {
    %c0_i32 = arith.constant 0 : i32
    %c0_i32_0 = arith.constant 0 : i32
    %c0_i32_1 = arith.constant 0 : i32
    return %c0_i32, %c0_i32_0 : i32, i32
  }
  func.func @transform_7(%arg0: i32) -> (i32, i32) {
    %c0_i32 = arith.constant 0 : i32
    %c0_i32_0 = arith.constant 0 : i32
    %c0_i32_1 = arith.constant 0 : i32
    return %c0_i32, %c0_i32_0 : i32, i32
  }
  func.func @transform_8(%arg0: i32) -> (i32, i32) {
    %c0_i32 = arith.constant 0 : i32
    %c0_i32_0 = arith.constant 0 : i32
    return %arg0, %c0_i32 : i32, i32
  }
}

</mosaic_0001>

<bundles_post_ra>
// kernel: tpu_custom_call.1
= control target key start
LH: loop header
LB: loop body
LE: loop exit
PB: predicated region body
PF: predicated region fallthrough
CT: control target
= control target key end

     0   :  { %vm38_vm0 = vcmask 1043456   ;;  %v606_v2 = vmov 0.0   ;;  %vm34_vm1 = vcmask 31744   ;;  %s736_s0 = inlined_call_operand.vmem [shape: f32[8,4], index: 0, kind: input, shape index: {}]   ;;  %s737_s1 = inlined_call_operand.vmem [shape: f32[8,4], index: 1, kind: input, shape index: {}]   ;;  %s738_s2 = inlined_call_operand.vmem [shape: f32[4,32], index: 2, kind: input, shape index: {}]   ;;  %s739_s3 = inlined_call_operand.vmem [shape: f32[4,32], index: 3, kind: input, shape index: {}]   ;;  %s740_s4 = inlined_call_operand.vmem [shape: f32[1,32], index: 4, kind: input, shape index: {}]   ;;  %s741_s5 = inlined_call_operand.vmem [shape: f32[32,128], index: 5, kind: input, shape index: {}]   ;;  %s742_s6 = inlined_call_operand.vmem [shape: f32[4,128], index: 6, kind: input, shape index: {}]   ;;  %s743_s7 = inlined_call_operand.vmem [shape: f32[1,128], index: 7, kind: input, shape index: {}]   ;;  %s744_s8 = inlined_call_operand.hbm [shape: f32[8,128], index: 8, kind: output, shape index: {}]  }
   0x1   :  { %v33_v0 = vld [vmem:[%s739_s3] sm:$0xf]  ;;  %526 = vmatprep.subr.mxu0 %v606_v2  ;;  %531 = vmatprep.subr.mxu1 %v606_v2 }
   0x2   :  { %v32_v1 = vld [vmem:[%s737_s1] sm:$0xff] }
   0x3   :  { %v31_v3 = vld [vmem:[%s738_s2] sm:$0xf] }
   0x4   :  { %v30_v4 = vld [vmem:[%s736_s0] sm:$0xff] }
   0x5   :  { %13 = vsyncpa [#allocation3], 0  ;;  %527 = vmatpush3.msk.msra.mxu0 %vm38_vm0, %v33_v0  ;;  %vm607_vm2 = vmmov 0   ;;  %532 = vmatpush3.msk.msra.mxu1 %vm38_vm0, %v31_v3  ;;  %v300_v5 = vld [vmem:[%s741_s5] sm:$0xff]  ;;  %v301_v6 = vld [vmem:[%s741_s5 + $0x8] sm:$0xff]  ;;  %v608_v8 = vmov 0.0|0.0  }
   0x6   :  { %528 = vmatprep.mubr.msk.f32.mxu0 %vm607_vm2, %v606_v2  ;;  %533 = vmatprep.mubr.msk.f32.mxu1 %vm607_vm2, %v606_v2  ;;  %v304_v7 = vld [vmem:[%s742_s6] sm:$0xf]  ;;  %v553_v9 = vpack.c.bf16 %v301_v6, %v300_v5  ;;  %v302_v10 = vld [vmem:[%s741_s5 + $0x10] sm:$0xff]  ;;  %v303_v11 = vld [vmem:[%s741_s5 + $0x18] sm:$0xff]  ;;  %v609_v30 = vmov 683565275  }
   0x7   :  { %529 = vmatmul.mubr.msk.f32.vlgmr.msra.gmra.mrb[0].mxu0 %vm34_vm1, %v32_v1  ;;  %534 = vmatmul.mubr.msk.f32.vlgmr.msra.gmra.mrb[0].mxu1 %vm34_vm1, %v30_v4  ;;  %v556_v12 = vpack.c.bf16 %v303_v11, %v302_v10  ;;  %v506_v15 = vld [vmem:[%s740_s4] ss:$0 sm:$0xff]  ;;  %v610_v32 = vmov 2475754826   ;;  %v611_v35 = vmov 2131351028  }
   0x8   :  { %536 = vmatprep.subr.mxu0 %v606_v2  ;;  %538 = vmatprep.mubr.msk.f32.mxu0 %vm607_vm2, %v606_v2  ;;  %v612_v38 = vmov 2102212464   ;;  %v613_v41 = vmov 920167782   ;;  %v614_v44 = vmov 1326507024  }
   0x9   :  { %549 = vmatprep.mubr.msk.f32.mxu1 %vm607_vm2, %v606_v2  ;;  %552 = vmatprep.subr.bf16.mxu1 %v608_v8  ;;  %vm378_vm15 = vcmask 261120  }
   0xa   :  { %537 = vmatpush3.msk.msra.mxu0 %vm38_vm0, %v304_v7  ;;  %554 = vmatpush3.bf16.msra.mxu1 %v553_v9 }
   0xb   :  { %539 = vmatmul.mubr.msk.f32.vlgmr.msra.gmra.mrb[2].mxu0 %vm34_vm1, %v30_v4  ;;  %555 = vmatprep.subr.bf16.mxu1 %v608_v8 }
   0xe   :  { %557 = vmatpush3.bf16.msra.mxu1 %v556_v12 }
  0xda   :  { %v108_v13 = vpop.f32.mrb[0].mxu0  ;;  %v184_v14 = vpop.f32.mrb[0].mxu1 }
  0xdb   :  { %v185_v16 = vadd.f32 %v184_v14, %v108_v13  ;;  %v530_v17 = vpop.f32.mrb[1].mxu0  ;;  %v535_v18 = vpop.f32.mrb[1].mxu1 }
  0xdd   :  { %v697_v19 = vadd.f32 %v506_v15, %v185_v16 }
  0xdf   :  { %v199_v20 = vand.u32 2139095040, %v697_v19  ;;  %v196_v24 = vand.u32 2147483647, %v697_v19  ;;  %vm198_vm10 = vcmp.lt.s32.totalorder %v697_v19, 0  ;;  %vm288_vm0 = vweird.f32 %v697_v19 }
  0xe1   :  { %v200_v21 = vshrl.u32 %v199_v20, 23  ;;  %v203_v27 = vand.u32 8388607, %v196_v24  ;;  %vm197_vm11 = vcmp.le.f32.partialorder %v196_v24, 0.7853982 }
  0xe3   :  { %v507_v22 = vadd.s32 4294967169, %v200_v21  ;;  %v204_v46 = vor.u32 8388608, %v203_v27 }
  0xe5   :  { %v206_v23 = vadd.s32 1, %v507_v22  ;;  %v244_v60 = vshll.u32 %v204_v46, 8 }
  0xe7   :  { %vm207_vm3 = vcmp.gt.s32.totalorder %v206_v23, 0 }
  0xe8   :  { %v208_v25 = vsel %vm207_vm3, %v206_v23, 0 }
  0xe9   :  { %v210_v26 = vand.u32 31, %v208_v25  ;;  %v209_v29 = vshrl.u32 %v208_v25, 5 }
  0xeb   :  { %v211_v28 = vsub.s32 32, %v210_v26  ;;  %v213_v31 = vshll.u32 %v609_v30, %v210_v26  ;;  %v216_v33 = vshll.u32 %v610_v32, %v210_v26  ;;  %v219_v37 = vshll.u32 %v611_v35, %v210_v26 }
  0xec   :  { %v222_v40 = vshll.u32 %v612_v38, %v210_v26  ;;  %v225_v43 = vshll.u32 %v613_v41, %v210_v26  ;;  %vm228_vm4 = vcmp.lt.s32.totalorder %v209_v29, 1  ;;  %vm231_vm5 = vcmp.lt.s32.totalorder %v209_v29, 4 }
  0xed   :  { %v214_v34 = vshrl.u32 %v610_v32, %v211_v28  ;;  %v217_v36 = vshrl.u32 %v611_v35, %v211_v28  ;;  %v220_v39 = vshrl.u32 %v612_v38, %v211_v28  ;;  %v223_v42 = vshrl.u32 %v613_v41, %v211_v28 }
  0xee   :  { %v226_v45 = vshrl.u32 %v614_v44, %v211_v28  ;;  %v212_v55 = vshrl.u32 %v609_v30, %v211_v28  ;;  %vm230_vm6 = vcmp.lt.s32.totalorder %v209_v29, 3  ;;  %vm229_vm7 = vcmp.lt.s32.totalorder %v209_v29, 2 }
  0xef   :  { %v215_v47 = vor.u32 %v214_v34, %v213_v31  ;;  %v218_v48 = vor.u32 %v217_v36, %v216_v33  ;;  %v221_v49 = vor.u32 %v220_v39, %v219_v37  ;;  %v224_v50 = vor.u32 %v223_v42, %v222_v40 }
  0xf0   :  { %v227_v51 = vor.u32 %v226_v45, %v225_v43 }
  0xf1   :  { %v233_v52 = vsel %vm231_vm5, %v221_v49, 2102212464  ;;  %v236_v53 = vsel %vm228_vm4, %v215_v47, %v218_v48  ;;  %v240_v54 = vsel %vm228_vm4, %v218_v48, %v221_v49  ;;  %v237_v56 = vsel %vm231_vm5, %v224_v50, 920167782 }
  0xf2   :  { %v241_v57 = vsel %vm231_vm5, %v227_v51, 1326507024  ;;  %v238_v58 = vsel %vm230_vm6, %v221_v49, %v237_v56  ;;  %v232_v61 = vsel %vm228_vm4, %v212_v55, %v215_v47  ;;  %v234_v62 = vsel %vm230_vm6, %v218_v48, %v233_v52  ;;  %v374_v48 = vpop.f32.mrb[2].mxu0 }
  0xf3   :  { %v242_v59 = vsel %vm230_vm6, %v224_v50, %v241_v57  ;;  %v239_v63 = vsel %vm229_vm7, %v236_v53, %v238_v58  ;;  %v235_v5 = vsel %vm229_vm7, %v232_v61, %v234_v62  ;;  %v540_v49 = vpop.f32.mrb[3].mxu0  ;;  %v460_v50 = vlaneseq  ;;  %v514_v53 = vld [vmem:[%s743_s7] ss:$0 sm:$0xff]  ;;  %s615_s7 = smov [#allocation2]  }
  0xf4   :  { %v243_v0 = vsel %vm229_vm7, %v240_v54, %v242_v59  ;;  %v706_v3 = vmul.u32.u64.low %v244_v60, %v239_v63  ;;  %v707_v4 = vmul.u32.u64.high %v244_v60, %v239_v63, %v706_v3  ;;  %v251_v7 = vmul.u32 %v244_v60, %v235_v5  ;;  %s494_s20 = sshll.u32 %s615_s7, 4  ;;  %s495_s20 = int_to_ptr.vmem [resolvable:$true] %s494_s20 }
  0xf5   :  { %v703_v1 = vmul.u32.u64.low %v244_v60, %v243_v0  ;;  %v704_v2 = vmul.u32.u64.high %v244_v60, %v243_v0, %v703_v1  ;;  %v461_v51 = vand.u32 127, %v460_v50  ;;  %s582_s21 = scalar_lea.vmem %s495_s20, 128  ;;  %p587_p1 = scmp.lt.s32.totalorder %s495_s20, %s495_s20 }
  0xf6   :  { %v254_v6 = vadd.s32 1, %v707_v4  ;;  %p583_p0 = scmp.ne.s32.totalorder %s495_s20, %s582_s21  ;;  %p588_p2 = scmp.lt.s32.totalorder %s582_s21, %s582_s21 }
  0xf7   :  { %vm253_vm8 = vc.u32 %v704_v2, %v706_v3  ;;  %v252_v20 = vadd.s32 %v706_v3, %v704_v2  ;;  %vm462_vm1 = vcmp.lt.s32.totalorder %v461_v51, 8  ;;  %vm466_vm2 = vcmp.ge.s32.totalorder %v461_v51, 40 }
  0xf8   :  { %v255_v8 = vsel %vm253_vm8, %v254_v6, %v707_v4  ;;  %vm467_vm3 = vcmp.lt.s32.totalorder %v461_v51, 72  ;;  %vm463_vm4 = vcmp.ge.s32.totalorder %v461_v51, 8  ;;  %vm464_vm5 = vcmp.lt.s32.totalorder %v461_v51, 40  ;;  %p589_p3 = por %p588_p2, %p587_p1 }
  0xf9   :  { %v256_v9 = vadd.s32 %v255_v8, %v251_v7  ;;  %vm468_vm6 = vmand %vm466_vm2, %vm467_vm3 }
  0xfa   :  { %vm465_vm7 = vmand %vm463_vm4, %vm464_vm5  ;;  %p590_p4 = pnand %p589_p3, %p583_p0 }
  0xfb   :  { %v257_v10 = vadd.s32 536870912, %v256_v9 }
  0xfd   :  { %v258_v11 = vshrl.u32 %v257_v10, 30 }
  0xff   :  { %v259_v12 = vshll.u32 %v258_v11, 30  ;;  %v282_v33 = vsub.s32 4, %v258_v11 }
 0x101   :  { %v260_v13 = vsub.s32 %v256_v9, %v259_v12  ;;  %v283_v36 = vsel %vm198_vm10, %v282_v33, %v258_v11 }
 0x102   :  { %v285_v38 = vsel %vm197_vm11, 0, %v283_v36 }
 0x103   :  { %v262_v14 = vsub.s32 0, %v260_v13  ;;  %v289_v39 = vadd.s32 3, %v285_v38 }
 0x105   :  { %v508_v15 = vmin.u32 %v262_v14, %v260_v13  ;;  %v290_v40 = vand.u32 3, %v289_v39 }
 0x107   :  { %v264_v16 = vclz %v508_v15  ;;  %vm295_vm12 = vcmp.eq.s32.totalorder %v290_v40, 2  ;;  %vm292_vm13 = vcmp.eq.s32.totalorder %v290_v40, 0  ;;  %vm291_vm14 = vcmp.lt.s32.totalorder %v290_v40, 2 }
 0x109   :  { %v509_v17 = vadd.s32 4294967294, %v264_v16 }
 0x10b   :  { %vm510_vm9 = vcmp.lt.s32.totalorder %v509_v17, 0 }
 0x10c   :  { %v267_v18 = vsel %vm510_vm9, 0, %v509_v17 }
 0x10d   :  { %v268_v21 = vsub.s32 32, %v267_v18  ;;  %v272_v22 = vsub.s32 4294967266, %v267_v18  ;;  %v269_v23 = vshll.u32 %v260_v13, %v267_v18 }
 0x10f   :  { %v270_v25 = vshrl.u32 %v252_v20, %v268_v21  ;;  %v273_v26 = vadd.s32 127, %v272_v22 }
 0x111   :  { %v271_v27 = vor.u32 %v270_v25, %v269_v23  ;;  %v274_v28 = vshll.u32 %v273_v26, 23 }
 0x113   :  { %v275_v29 = vor.u32 4788187, %v274_v28  ;;  %v278_v31 = vcvt.s32.f32 %v271_v27 }
 0x115   :  { %v276_v30 = vand.u32 2147483647, %v275_v29 }
 0x117   :  { %v279_v32 = vmul.f32 %v278_v31, %v276_v30 }
 0x119   :  { %v280_v34 = vxor.u32 2147483648, %v279_v32 }
 0x11b   :  { %v281_v35 = vsel %vm198_vm10, %v280_v34, %v279_v32 }
 0x11c   :  { %v284_v37 = vsel %vm197_vm11, %v697_v19, %v281_v35 }
 0x11d   :  { %572 = vcosq.f32 %v284_v37 }
 0x11e   :  { %574 = vsinq.f32 %v284_v37 }
 0x127   :  { %v573_v41 = vpop.eup %572 }
 0x128   :  { %v575_v42 = vpop.eup %574  ;;  %v296_v43 = vxor.u32 2147483648, %v573_v41 }
 0x129   :  { %v293_v44 = vxor.u32 2147483648, %v575_v42 }
 0x12a   :  { %v297_v45 = vsel %vm295_vm12, %v296_v43, %v575_v42 }
 0x12b   :  { %v294_v46 = vsel %vm292_vm13, %v573_v41, %v293_v44 }
 0x12c   :  { %v298_v24 = vsel %vm291_vm14, %v294_v46, %v297_v45 }
 0x12d   :  { %v299_v47 = vsel %vm288_vm0, nan, %v298_v24 }
 0x12e   :  { %550 = vmatmul.mubr.msk.f32.vlgmr.msra.gmra.mrb[2].mxu1 %vm378_vm15, %v299_v47 }
 0x201   :  { %v448_v52 = vpop.f32.mrb[2].mxu1 }
 0x202   :  { %v449_v54 = vadd.f32 %v448_v52, %v374_v48  ;;  %v551_v55 = vpop.f32.mrb[3].mxu1 }
 0x204   :  { %v459_v56 = vadd.f32 %v514_v53, %v449_v54 }
 0x206   :  { %v469_v57 = vsel %vm462_vm1, %v459_v56, -inf  ;;  %v480_v62 = vmax.f32 %v459_v56, -20.0  ;;  %v484_v5 = vsel %vm468_vm6, %v459_v56, 0.0 }
 0x207   :  { %470 = vmax.xlane.f32.xlu0 %v469_v57 }
 0x208   :  { %v481_v63 = vmin.f32 %v480_v62, 4.0 }
 0x20a   :  { %v482_v0 = vmul.f32 1.442695, %v481_v63 }
 0x294   :  { %v471_v19 = vpop.xlane.xlu0 %470 }
 0x295   :  { %v472_v58 = vsub.f32 %v459_v56, %v471_v19 }
 0x297   :  { %v473_v59 = vsel %vm462_vm1, %v472_v58, -inf }
 0x298   :  { %v474_v60 = vmul.f32 1.442695, %v473_v59 }
 0x29a   :  { %576 = vpow2.f32 %v474_v60 }
 0x29b   :  { %578 = vpow2.f32 %v482_v0 }
 0x2a4   :  { %v577_v61 = vpop.eup %576 }
 0x2a5   :  { %476 = vadd.xlane.f32.xlu0 %v577_v61  ;;  %v579_v2 = vpop.eup %578 }
 0x2a6   :  { %v485_v6 = vsel %vm465_vm7, %v579_v2, %v484_v5 }
 0x332   :  { %v477_v1 = vpop.xlane.xlu0 %476 }
 0x333   :  { %580 = vrcp.f32 %v477_v1 }
 0x33d   :  { %v581_v3 = vpop.eup %580 }
 0x33e   :  { %v479_v4 = vmul.f32 %v581_v3, %v577_v61 }
 0x340   :  { %v486_v7 = vsel %vm462_vm1, %v479_v4, %v485_v6 }
 0x341   :  { %487 = vst [vmem:[#allocation2] sm:$0xff] %v486_v7 }
 0x342   :  { %593 = shalt.err (!%p590_p4)
}
 0x343   :  { %s594_s24 = scalar_lea.hbm %s744_s8, 128 }
 0x344   :  { %p595_p5 = scmp.ne.s32.totalorder %s744_s8, %s594_s24  ;;  %p598_p6 = scmp.lt.u32.totalorder %s594_s24, %s744_s8 }
 0x346   :  { %p600_p7 = pnand %p598_p6, %p595_p5 }
 0x348   :  { %603 = shalt.err (!%p600_p7)
}
 0x349   :  { %497 = dma.vmem_to_hbm [thread:$0]  %s495_s20, 128, %s744_s8, [#allocation3]  }
 0x34a   :  { %604 = dma.done.wait [#allocation3], 128  }
 0x34b   :  { %605 = vsyncadd [#allocation3], 4294967168 }
 0x34c   :  { %501 = vsyncpa [#allocation3], 1 }

</bundles_post_ra>
